<compile_context>
chip_gen: v5e
topology: v5e:2x2
jax: 0.10.0
libtpu: 0.0.40
codegen_flags: <defaults>
</compile_context>

<pallas_src>
import functools
import math

import jax
import jax.numpy as jnp
from jax import lax
from jax.experimental import pallas as pl
from jax.experimental.pallas import tpu as pltpu


_LANE = 128
_VMEM_LIMIT = 32 * 1024 * 1024          # safe on v5e / v6e / v7x (64 MiB/TC)


def _round_up(x, m):
    return ((x + m - 1) // m) * m


def _pick_tile(padded_dim, candidates):
    """Largest candidate that divides padded_dim (padded_dim % 128 == 0)."""
    for c in candidates:
        if padded_dim % c == 0:
            return c
    return _LANE


# ---------------------------------------------------------------------------
# One-time preprocessing (amortised across all layers / forwards)
# ---------------------------------------------------------------------------

def preprocess_graph(a, *, fill=1.0):
    """A -> padded bf16 A_hat^T = (dis * (A + fill*I) * dis)^T, done once."""
    n = a.shape[0]
    n_pad = _round_up(max(n, _LANE), _LANE)
    a = a.astype(jnp.float32)
    a_tilde = a + fill * jnp.eye(n, dtype=jnp.float32)
    deg = jnp.sum(a_tilde, axis=0)                       # target (column) degrees
    dis = jnp.where(deg > 0.0, lax.rsqrt(deg), 0.0)
    a_hat_t = ((dis[:, None] * a_tilde) * dis[None, :]).T   # transpose once (XLA)
    a_pad = jnp.zeros((n_pad, n_pad), jnp.bfloat16)
    a_pad = a_pad.at[:n, :n].set(a_hat_t.astype(jnp.bfloat16))
    return a_pad


def preprocess_params(params):
    """Pad + pre-cast weights to bf16 (biases stay f32), done once."""
    out = []
    for p in params:
        c_i, c_o = p["W"].shape
        c_i_pad = _round_up(c_i, _LANE)
        c_o_pad = _round_up(c_o, _LANE)
        w_pad = jnp.zeros((c_i_pad, c_o_pad), jnp.bfloat16)
        w_pad = w_pad.at[:c_i, :c_o].set(p["W"].astype(jnp.bfloat16))
        b_pad = jnp.zeros((1, c_o_pad), jnp.float32)
        b_pad = b_pad.at[:, :c_o].set(p["b"].astype(jnp.float32))
        out.append({"W": w_pad, "b": b_pad, "in_dim": c_i, "out_dim": c_o})
    return out


# ---------------------------------------------------------------------------
# Kernel 1: H = X @ W  (bf16 operands, f32 accumulate, bf16 output)
# ---------------------------------------------------------------------------

def _linear_kernel(x_ref, w_ref, o_ref):
    o_ref[...] = jnp.dot(x_ref[...].astype(jnp.bfloat16), w_ref[...],
                         preferred_element_type=jnp.float32).astype(o_ref.dtype)


def linear(x_pad, w_pad, tile_m, tile_f):
    n_pad, c_pad = x_pad.shape
    f_pad = w_pad.shape[1]
    return pl.pallas_call(
        _linear_kernel,
        out_shape=jax.ShapeDtypeStruct((n_pad, f_pad), jnp.bfloat16),
        grid_spec=pltpu.PrefetchScalarGridSpec(
            num_scalar_prefetch=0,
            grid=(n_pad // tile_m, f_pad // tile_f),
            in_specs=[pl.BlockSpec((tile_m, c_pad), lambda i, j: (i, 0)),
                      pl.BlockSpec((c_pad, tile_f), lambda i, j: (0, j))],
            out_specs=pl.BlockSpec((tile_m, tile_f), lambda i, j: (i, j)),
        ),
        compiler_params=pltpu.CompilerParams(
            dimension_semantics=("parallel", "parallel"),
            vmem_limit_bytes=_VMEM_LIMIT,
        ),
    )(x_pad, w_pad)


# ---------------------------------------------------------------------------
# Kernel 2: out = A_hat^T @ H + b   (+ optional ReLU)
#   A_hat^T already holds the self-loop and the dis-normalisation (bf16);
#   plain tiled matmul with an f32 accumulator, fused bias + ReLU at finalise.
# ---------------------------------------------------------------------------

def _agg_kernel(a_ref, h_ref, b_ref, o_ref, acc_ref, *, apply_relu):
    k = pl.program_id(2)

    @pl.when(k == 0)
    def _init():
        acc_ref[...] = jnp.zeros_like(acc_ref)

    acc_ref[...] += jnp.dot(a_ref[...], h_ref[...],
                            preferred_element_type=jnp.float32)

    @pl.when(k == pl.num_programs(2) - 1)
    def _fin():
        out = acc_ref[...] + b_ref[...]
        if apply_relu:
            out = jnp.maximum(out, 0.0)
        o_ref[...] = out.astype(o_ref.dtype)


def gcn_aggregate(a_hat_pad, h, b_pad, *, tile_m, tile_k, tile_f,
                  apply_relu, out_dtype):
    n_pad = a_hat_pad.shape[0]
    f_pad = h.shape[1]
    kern = functools.partial(_agg_kernel, apply_relu=apply_relu)
    return pl.pallas_call(
        kern,
        out_shape=jax.ShapeDtypeStruct((n_pad, f_pad), out_dtype),
        grid_spec=pltpu.PrefetchScalarGridSpec(
            num_scalar_prefetch=0,
            grid=(n_pad // tile_m, f_pad // tile_f, n_pad // tile_k),
            in_specs=[
                pl.BlockSpec((tile_m, tile_k), lambda i, j, k: (i, k)),   # A_hat^T
                pl.BlockSpec((tile_k, tile_f), lambda i, j, k: (k, j)),   # H
                pl.BlockSpec((1, tile_f),      lambda i, j, k: (0, j)),   # bias
            ],
            out_specs=pl.BlockSpec((tile_m, tile_f), lambda i, j, k: (i, j)),
            scratch_shapes=[pltpu.VMEM((tile_m, tile_f), jnp.float32)],
        ),
        compiler_params=pltpu.CompilerParams(
            dimension_semantics=("parallel", "parallel", "arbitrary"),
            vmem_limit_bytes=_VMEM_LIMIT,
        ),
    )(a_hat_pad, h, b_pad)


# ---------------------------------------------------------------------------
# GCNencoder: parameters + forward
# ---------------------------------------------------------------------------

def init_gcn_encoder_params(key, layer_dims):
    params = []
    keys = jax.random.split(key, len(layer_dims) - 1)
    for i in range(len(layer_dims) - 1):
        fan_in, fan_out = layer_dims[i], layer_dims[i + 1]
        lim = math.sqrt(6.0 / (fan_in + fan_out))                 # PyG glorot
        W = jax.random.uniform(keys[i], (fan_in, fan_out), jnp.float32, -lim, lim)
        b = jnp.zeros((1, fan_out), jnp.float32)                  # PyG zeros bias
        params.append({"W": W, "b": b})
    return params


def gcn_encoder_forward(pre_params, a_hat_pad, x):
    """GCNencoder.forward: x -> [GCNConv -> ReLU] per layer.

    `pre_params` / `a_hat_pad` come from the one-time preprocessing helpers.
    """
    n = x.shape[0]
    n_pad = a_hat_pad.shape[0]

    # output-row tile, reduction (k) tile over nodes: big k-tiles, bf16 A_hat.
    tile_m = _pick_tile(n_pad, (256, 128))
    tile_k = _pick_tile(n_pad, (512, 256, 128))

    c0 = pre_params[0]["in_dim"]
    c0_pad = pre_params[0]["W"].shape[0]
    h = jnp.zeros((n_pad, c0_pad), jnp.float32).at[:n, :c0].set(
        x.astype(jnp.float32))

    n_layers = len(pre_params)
    for li, p in enumerate(pre_params):
        last = (li == n_layers - 1)
        f_pad = p["W"].shape[1]
        # A_hat is streamed exactly once per layer whenever f_pad <= 512.
        tile_f = f_pad if f_pad <= 512 else _pick_tile(f_pad, (512, 256, 128))
        hw = linear(h, p["W"], tile_m, tile_f)                    # (n_pad, f_pad) bf16
        out_dtype = jnp.float32 if last else jnp.bfloat16         # bf16 between layers
        h = gcn_aggregate(a_hat_pad, hw, p["b"],
                          tile_m=tile_m, tile_k=tile_k, tile_f=tile_f,
                          apply_relu=True, out_dtype=out_dtype)

    return h[:n, :pre_params[-1]["out_dim"]]


def gcn_encoder_reference(params, x, a, *, fill=1.0):
    """Plain-JAX reference (dense GCNConv + ReLU stack) for validation."""
    n = x.shape[0]
    a_tilde = a + fill * jnp.eye(n, dtype=a.dtype)
    deg = jnp.sum(a_tilde, axis=0)
    dis = jnp.where(deg > 0, 1.0 / jnp.sqrt(deg), 0.0)
    a_hat = dis[:, None] * a_tilde * dis[None, :]
    h = x
    for p in params:
        h = jnp.maximum(a_hat.T @ (h @ p["W"]) + p["b"], 0.0)
    return h


# ---------------------------------------------------------------------------
# Demo
# ---------------------------------------------------------------------------

if __name__ == "__main__":
    key = jax.random.PRNGKey(0)
    k_x, k_w, k_p = jax.random.split(key, 3)

    N = 20
    LAYER_DIMS = [4, 32, 16]             # in -> hidden -> out

    x = jax.random.normal(k_x, (N, LAYER_DIMS[0]), jnp.float32)

    # undirected ring + chord graph with random positive edge weights,
    # symmetric and self-loop free (matching PyG's undirected edge_index).
    src = jnp.arange(N, dtype=jnp.int32)
    ring_dst = (src + 1) % N
    chord_dst = (src + 3) % N
    rows = jnp.concatenate([src, src])
    cols = jnp.concatenate([ring_dst, chord_dst])
    w = jax.random.uniform(k_w, (2 * N,), jnp.float32, 0.5, 1.5)
    a = jnp.zeros((N, N), jnp.float32).at[rows, cols].set(w)
    a = jnp.maximum(a, a.T)                               # symmetrize (undirected)
    a = a * (1.0 - jnp.eye(N, dtype=jnp.float32))         # enforce no self loops

    params = init_gcn_encoder_params(k_p, LAYER_DIMS)

    # one-time preprocessing (amortised across forwards / layers)
    a_hat_pad = preprocess_graph(a, fill=1.0)
    pre_params = preprocess_params(params)

    out = gcn_encoder_forward(pre_params, a_hat_pad, x)
    out = jax.block_until_ready(out)

    assert out.shape == (N, LAYER_DIMS[-1]), out.shape
    assert bool(jnp.all(jnp.isfinite(out)))

    ref = gcn_encoder_reference(params, x, a)
    max_err = float(jnp.max(jnp.abs(out - ref)))
    assert max_err < 5e-2, f"max abs err vs reference: {max_err}"

    print("KERNEL_OK")
</pallas_src>

<mosaic_0001>
module attributes {stable_mosaic.version = 11 : i64} {
  func.func @_linear_kernel(%arg0: i32, %arg1: i32, %arg2: memref<128x128xf32, #tpu.memory_space<vmem>>, %arg3: memref<128x128xbf16, #tpu.memory_space<vmem>>, %arg4: memref<128x128xbf16, #tpu.memory_space<vmem>>) attributes {dimension_semantics = [#tpu.dimension_semantics<parallel>, #tpu.dimension_semantics<parallel>], iteration_bounds = array<i64: 1, 1>, scalar_prefetch = 0 : i64, scratch_operands = 0 : i64, tpu.core_type = #tpu.core_type<tc>, window_params = [{transform_indices = @transform_0, window_bounds = array<i64: 128, 128>}, {transform_indices = @transform_1, window_bounds = array<i64: 128, 128>}, {transform_indices = @transform_2, window_bounds = array<i64: 128, 128>}]} {
    %c0 = arith.constant 0 : index
    %c0_0 = arith.constant 0 : index
    %0 = vector.load %arg2[%c0, %c0_0] : memref<128x128xf32, #tpu.memory_space<vmem>>, vector<128x128xf32>
    %1 = arith.truncf %0 : vector<128x128xf32> to vector<128x128xbf16>
    %c0_1 = arith.constant 0 : index
    %c0_2 = arith.constant 0 : index
    %2 = vector.load %arg3[%c0_1, %c0_2] : memref<128x128xbf16, #tpu.memory_space<vmem>>, vector<128x128xbf16>
    %cst = arith.constant dense<0.000000e+00> : vector<128x128xf32>
    %3 = tpu.matmul %1, %2, %cst {dimension_numbers = #tpu.dot_dimension_numbers<[1], [0], [0], [1], [0, 0, 1, 1], [], []>} : vector<128x128xbf16>, vector<128x128xbf16>, vector<128x128xf32> -> vector<128x128xf32>
    %4 = arith.truncf %3 : vector<128x128xf32> to vector<128x128xbf16>
    %c0_3 = arith.constant 0 : index
    %c0_4 = arith.constant 0 : index
    %5 = vector.load %arg4[%c0_3, %c0_4] : memref<128x128xbf16, #tpu.memory_space<vmem>>, vector<128x128xbf16>
    tpu.vector_store %arg4[%c0_3, %c0_4], %4 {strides = array<i32>} : memref<128x128xbf16, #tpu.memory_space<vmem>>, vector<128x128xbf16>,
    return
  }
  func.func @transform_0(%arg0: i32, %arg1: i32) -> (i32, i32) {
    %c0_i32 = arith.constant 0 : i32
    %c0_i32_0 = arith.constant 0 : i32
    return %arg0, %c0_i32 : i32, i32
  }
  func.func @transform_1(%arg0: i32, %arg1: i32) -> (i32, i32) {
    %c0_i32 = arith.constant 0 : i32
    %c0_i32_0 = arith.constant 0 : i32
    return %c0_i32, %arg1 : i32, i32
  }
  func.func @transform_2(%arg0: i32, %arg1: i32) -> (i32, i32) {
    %c0_i32 = arith.constant 0 : i32
    return %arg0, %arg1 : i32, i32
  }
}

</mosaic_0001>

<bundles_post_ra>
// kernel: tpu_custom_call.1
= control target key start
LH: loop header
LB: loop body
LE: loop exit
PB: predicated region body
PF: predicated region fallthrough
CT: control target
= control target key end

     0   :  { %7 = vsyncpa [#allocation3], 0  ;;  %s466_s0 = inlined_call_operand.hbm [shape: f32[128,128], index: 0, kind: input, shape index: {}]   ;;  %s467_s1 = inlined_call_operand.hbm [shape: bf16[128,128], index: 1, kind: input, shape index: {}]   ;;  %s468_s2 = inlined_call_operand.hbm [shape: bf16[128,128], index: 2, kind: output, shape index: {}]  }
   0x1   :  { %8 = vsyncpa [#allocation6], 0 }
   0x2   :  { %9 = vsyncpa [#allocation4], 0  ;;  %s14_s11 = sshll.u32 %s466_s0, 4  ;;  %s429_s12 = smov [#allocation2]   ;;  %s15_s11 = int_to_ptr.hbm [resolvable:$true] %s14_s11 }
   0x3   :  { %s16_s13 = sshll.u32 %s429_s12, 4  ;;  %s27_s16 = sshll.u32 %s467_s1, 4  ;;  %s17_s13 = int_to_ptr.vmem [resolvable:$true] %s16_s13  ;;  %s28_s16 = int_to_ptr.hbm [resolvable:$true] %s27_s16 }
   0x4   :  { %s430_s17 = smov 128   ;;  %s431_s18 = smov 8  }
   0x5   :  { %22 = dma.hbm_to_vmem [thread:$0]  %s15_s11, 2048, %s17_s13, [#allocation3], %s430_s17, %s430_s17, %s431_s18  }
   0x6   :  { %s432_s19 = smov [#allocation5]   ;;  %s433_s21 = smov 64  }
   0x7   :  { %s29_s20 = sshll.u32 %s432_s19, 4  ;;  %s434_s22 = smov 4   ;;  %s30_s20 = int_to_ptr.vmem [resolvable:$true] %s29_s20 }
   0x8   :  { %35 = dma.hbm_to_vmem [thread:$0]  %s28_s16, 1024, %s30_s20, [#allocation6], %s433_s21, %s433_s21, %s434_s22  }
   0x9   :  { %423 = dma.done.wait [#allocation3], 2048  }
   0xa   :  { %424 = vsyncadd [#allocation3], 4294965248 }
   0xb   :  { %425 = dma.done.wait [#allocation6], 1024  }
   0xc   :  { %426 = vsyncadd [#allocation6], 4294966272  ;;  %v272_v0 = vld [vmem:[#allocation5 + $0x38] sm:$0xff]  ;;  %v271_v1 = vld [vmem:[#allocation5 + $0x30] sm:$0xff]  ;;  %s435_s0 = smov [#allocation7]   ;;  %s219_s25 = sshll.u32 %s468_s2, 4  ;;  %s220_s25 = int_to_ptr.hbm [resolvable:$true] %s219_s25 }
   0xd   :  { %132 = vmatpush.bf16.msra.mxu0 %v272_v0  ;;  %320 = vmatpush.bf16.msra.mxu1 %v272_v0  ;;  %v270_v2 = vld [vmem:[#allocation5 + $0x28] sm:$0xff]  ;;  %v269_v3 = vld [vmem:[#allocation5 + $0x20] sm:$0xff]  ;;  %v268_v4 = vld [vmem:[#allocation5 + $0x18] sm:$0xff]  ;;  %s217_s1 = sshll.u32 %s435_s0, 4  ;;  %s218_s1 = int_to_ptr.vmem [resolvable:$true] %s217_s1 }
   0xe   :  { %321 = vmatpush.bf16.msra.mxu2 %v272_v0  ;;  %322 = vmatpush.bf16.msra.mxu3 %v272_v0  ;;  %v267_v5 = vld [vmem:[#allocation5 + $0x10] sm:$0xff]  ;;  %v266_v6 = vld [vmem:[#allocation5 + $0x8] sm:$0xff]  ;;  %v265_v7 = vld [vmem:[#allocation5] sm:$0xff] }
   0xf   :  { %v44_v8 = vld [vmem:[#allocation2] sm:$0xff]  ;;  %v45_v9 = vld [vmem:[#allocation2 + $0x8] sm:$0xff]  ;;  %v46_v20 = vld [vmem:[#allocation2 + $0x10] sm:$0xff] }
  0x10   :  { %v48_v10 = vld [vmem:[#allocation2 + $0x20] sm:$0xff]  ;;  %v49_v11 = vld [vmem:[#allocation2 + $0x28] sm:$0xff]  ;;  %v60_v16 = vpack.c.bf16 %v45_v9, %v44_v8  ;;  %v47_v21 = vld [vmem:[#allocation2 + $0x18] sm:$0xff] }
  0x11   :  { %133 = vmatpush.bf16.msra.mxu0 %v271_v1  ;;  %323 = vmatpush.bf16.msra.mxu1 %v271_v1  ;;  %v52_v12 = vld [vmem:[#allocation2 + $0x40] sm:$0xff]  ;;  %v53_v13 = vld [vmem:[#allocation2 + $0x48] sm:$0xff]  ;;  %v62_v17 = vpack.c.bf16 %v49_v11, %v48_v10  ;;  %v50_v22 = vld [vmem:[#allocation2 + $0x30] sm:$0xff]  ;;  %v61_v28 = vpack.c.bf16 %v47_v21, %v46_v20 }
  0x12   :  { %324 = vmatpush.bf16.msra.mxu2 %v271_v1  ;;  %325 = vmatpush.bf16.msra.mxu3 %v271_v1  ;;  %v56_v14 = vld [vmem:[#allocation2 + $0x60] sm:$0xff]  ;;  %v57_v15 = vld [vmem:[#allocation2 + $0x68] sm:$0xff]  ;;  %v64_v18 = vpack.c.bf16 %v53_v13, %v52_v12  ;;  %v51_v23 = vld [vmem:[#allocation2 + $0x38] sm:$0xff] }
  0x13   :  { %v66_v19 = vpack.c.bf16 %v57_v15, %v56_v14  ;;  %v54_v24 = vld [vmem:[#allocation2 + $0x50] sm:$0xff]  ;;  %v55_v25 = vld [vmem:[#allocation2 + $0x58] sm:$0xff]  ;;  %v63_v29 = vpack.c.bf16 %v51_v23, %v50_v22 }
  0x14   :  { %v58_v26 = vld [vmem:[#allocation2 + $0x70] sm:$0xff]  ;;  %v59_v27 = vld [vmem:[#allocation2 + $0x78] sm:$0xff]  ;;  %v65_v30 = vpack.c.bf16 %v55_v25, %v54_v24 }
  0x15   :  { %134 = vmatpush.bf16.msra.mxu0 %v270_v2  ;;  %326 = vmatpush.bf16.msra.mxu1 %v270_v2  ;;  %v67_v31 = vpack.c.bf16 %v59_v27, %v58_v26 }
  0x16   :  { %327 = vmatpush.bf16.msra.mxu2 %v270_v2  ;;  %328 = vmatpush.bf16.msra.mxu3 %v270_v2 }
  0x19   :  { %135 = vmatpush.bf16.msra.mxu0 %v269_v3  ;;  %329 = vmatpush.bf16.msra.mxu1 %v269_v3 }
  0x1a   :  { %330 = vmatpush.bf16.msra.mxu2 %v269_v3  ;;  %331 = vmatpush.bf16.msra.mxu3 %v269_v3 }
  0x1d   :  { %136 = vmatpush.bf16.msra.mxu0 %v268_v4  ;;  %332 = vmatpush.bf16.msra.mxu1 %v268_v4 }
  0x1e   :  { %333 = vmatpush.bf16.msra.mxu2 %v268_v4  ;;  %334 = vmatpush.bf16.msra.mxu3 %v268_v4 }
  0x21   :  { %137 = vmatpush.bf16.msra.mxu0 %v267_v5  ;;  %335 = vmatpush.bf16.msra.mxu1 %v267_v5 }
  0x22   :  { %336 = vmatpush.bf16.msra.mxu2 %v267_v5  ;;  %337 = vmatpush.bf16.msra.mxu3 %v267_v5 }
  0x25   :  { %138 = vmatpush.bf16.msra.mxu0 %v266_v6  ;;  %338 = vmatpush.bf16.msra.mxu1 %v266_v6 }
  0x26   :  { %339 = vmatpush.bf16.msra.mxu2 %v266_v6  ;;  %340 = vmatpush.bf16.msra.mxu3 %v266_v6 }
  0x29   :  { %139 = vmatpush.bf16.msra.mxu0 %v265_v7  ;;  %341 = vmatpush.bf16.msra.mxu1 %v265_v7 }
  0x2a   :  { %342 = vmatpush.bf16.msra.mxu2 %v265_v7  ;;  %343 = vmatpush.bf16.msra.mxu3 %v265_v7 }
  0x2c   :  { %140 = vmatmul.bf16.vlgmr.msra.gmra.mxu0 %v60_v16  ;;  %150 = vmatmul.bf16.vlgmr.msra.gmra.mxu1 %v62_v17 }
  0x2d   :  { %160 = vmatmul.bf16.vlgmr.msra.gmra.mxu2 %v64_v18  ;;  %170 = vmatmul.bf16.vlgmr.msra.gmra.mxu3 %v66_v19 }
  0x3c   :  { %145 = vmatmul.bf16.gmra.mxu0 %v61_v28  ;;  %155 = vmatmul.bf16.gmra.mxu1 %v63_v29 }
  0x3d   :  { %165 = vmatmul.bf16.gmra.mxu2 %v65_v30  ;;  %175 = vmatmul.bf16.gmra.mxu3 %v67_v31 }
  0xa9   :  { %v141_v32 = vpop.f32.mrf.mxu0  ;;  %v151_v33 = vpop.f32.mrf.mxu1 }
  0xb0   :  { %v161_v34 = vpop.f32.mrf.mxu2  ;;  %v171_v35 = vpop.f32.mrf.mxu3 }
  0xb1   :  { %v143_v36 = vpop.f32.mrf.mxu0  ;;  %v153_v37 = vpop.f32.mrf.mxu1 }
  0xb2   :  { %v276_v38 = vpack.c.bf16 %v143_v36, %v141_v32  ;;  %v286_v39 = vpack.c.bf16 %v153_v37, %v151_v33 }
  0xb4   :  { %277 = vst [vmem:[#allocation7] sm:$0xff] %v276_v38  }
  0xb5   :  { %314 = vst [vmem:[#allocation7 + $0x10] sm:$0xff] %v286_v39  }
  0xb8   :  { %v163_v40 = vpop.f32.mrf.mxu2  ;;  %v173_v41 = vpop.f32.mrf.mxu3 }
  0xb9   :  { %v296_v42 = vpack.c.bf16 %v163_v40, %v161_v34  ;;  %v306_v43 = vpack.c.bf16 %v173_v41, %v171_v35  ;;  %v146_v44 = vpop.f32.mrf.mxu0  ;;  %v156_v45 = vpop.f32.mrf.mxu1 }
  0xbb   :  { %316 = vst [vmem:[#allocation7 + $0x20] sm:$0xff] %v296_v42  }
  0xbc   :  { %318 = vst [vmem:[#allocation7 + $0x30] sm:$0xff] %v306_v43  }
  0xc0   :  { %v166_v46 = vpop.f32.mrf.mxu2  ;;  %v176_v47 = vpop.f32.mrf.mxu3 }
  0xc1   :  { %v148_v48 = vpop.f32.mrf.mxu0  ;;  %v158_v49 = vpop.f32.mrf.mxu1 }
  0xc2   :  { %v281_v50 = vpack.c.bf16 %v148_v48, %v146_v44  ;;  %v291_v51 = vpack.c.bf16 %v158_v49, %v156_v45 }
  0xc4   :  { %313 = vst [vmem:[#allocation7 + $0x8] sm:$0xff] %v281_v50  }
  0xc5   :  { %315 = vst [vmem:[#allocation7 + $0x18] sm:$0xff] %v291_v51  }
  0xc8   :  { %v168_v52 = vpop.f32.mrf.mxu2  ;;  %v178_v53 = vpop.f32.mrf.mxu3 }
  0xc9   :  { %v301_v54 = vpack.c.bf16 %v168_v52, %v166_v46  ;;  %v311_v55 = vpack.c.bf16 %v178_v53, %v176_v47 }
  0xcb   :  { %317 = vst [vmem:[#allocation7 + $0x28] sm:$0xff] %v301_v54  }
  0xcc   :  { %319 = vst [vmem:[#allocation7 + $0x38] sm:$0xff] %v311_v55  }
  0xcd   :  { %225 = dma.vmem_to_hbm [thread:$0]  %s218_s1, 1024, %s220_s25, [#allocation4], %s433_s21, %s433_s21, %s434_s22  }
  0xce   :  { %427 = dma.done.wait [#allocation4], 1024  }
  0xcf   :  { %428 = vsyncadd [#allocation4], 4294966272 }
  0xd0   :  { %230 = vsyncpa [#allocation3], 1 }
  0xd1   :  { %231 = vsyncpa [#allocation6], 1 }
  0xd2   :  { %232 = vsyncpa [#allocation4], 1 }

</bundles_post_ra>
